<compile_context>
chip_gen: v7x
topology: tpu7x:2x2x1
jax: 0.10.0
libtpu: 0.0.40
codegen_flags: <defaults>
</compile_context>

<pallas_src>
import numpy as np
import jax
import jax.numpy as jnp
from jax import lax
from jax.experimental import pallas as pl
from jax.experimental.pallas import tpu as pltpu

LANE = 128
NEG = -1e4  # large-negative pad value (never -inf: keeps the exp-space CRF NaN-free)


def _round_up(x, m):
    return ((x + m - 1) // m) * m


# ------------------------------ Pallas kernels ------------------------------

def _linear_kernel(x_ref, w_ref, b_ref, o_ref):
    """Row-tiled  x @ w + b  with a lane-dense output tile."""
    o_ref[...] = (jnp.dot(x_ref[...].astype(w_ref.dtype), w_ref[...],
                          preferred_element_type=jnp.float32)
                  + b_ref[...]).astype(o_ref.dtype)


def _bilstm_recurrence_kernel(g_ref, m_ref, whh_f_ref, whh_b_ref, out_ref,
                              hf, cf, hb, cb):
    """Serial part of one bidirectional LSTM layer (both directions per iteration).

    g_ref:   (T, B, 8H) f32   precomputed x @ W_ih + (b_ih + b_hh); cols 0:4H hold the
                              forward-direction gate pre-activations, 4H:8H backward;
                              gate order [i, f, g, o].
    m_ref:   (T, B, 1)  f32   mask (1.0 valid / 0.0 pad)
    whh_*:   (H, 4H)    bf16  recurrent weights (forward / backward)
    out_ref: (T, B, 2H) bf16  cols 0:H fwd hidden, H:2H bwd hidden (0 at pad positions)
    """
    T = g_ref.shape[0]
    H = whh_f_ref.shape[0]
    G4 = 4 * H

    hf[...] = jnp.zeros_like(hf)
    cf[...] = jnp.zeros_like(cf)
    hb[...] = jnp.zeros_like(hb)
    cb[...] = jnp.zeros_like(cb)

    def _cell(gates, c_prev):
        i_g = jax.nn.sigmoid(gates[:, 0:H])
        f_g = jax.nn.sigmoid(gates[:, H:2 * H])
        g_g = jnp.tanh(gates[:, 2 * H:3 * H])
        o_g = jax.nn.sigmoid(gates[:, 3 * H:4 * H])
        c_new = f_g * c_prev + i_g * g_g
        return o_g * jnp.tanh(c_new), c_new

    def step(i, carry):
        tf = i                # forward time index
        tb = T - 1 - i        # backward time index

        gate_f = g_ref[tf, :, 0:G4] + jnp.dot(
            hf[...].astype(whh_f_ref.dtype), whh_f_ref[...],
            preferred_element_type=jnp.float32)
        gate_b = g_ref[tb, :, G4:2 * G4] + jnp.dot(
            hb[...].astype(whh_b_ref.dtype), whh_b_ref[...],
            preferred_element_type=jnp.float32)

        h_f, c_f = _cell(gate_f, cf[...])
        h_b, c_b = _cell(gate_b, cb[...])

        keep_f = m_ref[tf] > 0.0
        keep_b = m_ref[tb] > 0.0

        hf[...] = jnp.where(keep_f, h_f, hf[...])
        cf[...] = jnp.where(keep_f, c_f, cf[...])
        hb[...] = jnp.where(keep_b, h_b, hb[...])
        cb[...] = jnp.where(keep_b, c_b, cb[...])

        out_ref[tf, :, 0:H] = jnp.where(keep_f, h_f, 0.0).astype(out_ref.dtype)
        out_ref[tb, :, H:2 * H] = jnp.where(keep_b, h_b, 0.0).astype(out_ref.dtype)
        return carry

    lax.fori_loop(0, T, step, 0, unroll=max(1, min(T, 8)))


def _crf_logz_kernel(logit_ref, m_ref, trans_ref, start_ref, end_ref, logz_ref,
                     alpha_scr):
    """CRF forward algorithm (log partition) on lane-padded labels.

    logit_ref: (T, B, Lp) f32; trans_ref: (Lp, Lp); start/end: (1, Lp).
    Pad rows/cols of trans/start/end hold -1e4 (never -inf).  exp(trans) is hoisted out
    of the time loop and column-max shifted for stability.
    """
    T = logit_ref.shape[0]
    trans = trans_ref[...]
    cmax = jnp.max(trans, axis=0, keepdims=True)      # (1, Lp)
    etrans = jnp.exp(trans - cmax)                    # entries <= 1, hoisted

    alpha_scr[...] = logit_ref[0] + start_ref[...]    # (B, Lp)

    def step(t, carry):
        alpha = alpha_scr[...]
        mxa = jnp.max(alpha, axis=-1, keepdims=True)
        # new_alpha[b, j] = logsumexp_i(alpha[b, i] + trans[i, j]) + logit[t, b, j]
        s = jnp.dot(jnp.exp(alpha - mxa), etrans, preferred_element_type=jnp.float32)
        new_alpha = jnp.log(jnp.maximum(s, 1e-30)) + mxa + cmax + logit_ref[t]
        keep = m_ref[t] > 0.0
        alpha_scr[...] = jnp.where(keep, new_alpha, alpha)
        return carry

    lax.fori_loop(1, T, step, 0, unroll=max(1, min(T - 1, 8)))

    alpha_fin = alpha_scr[...] + end_ref[...]
    mx = jnp.max(alpha_fin, axis=-1, keepdims=True)
    logz_ref[...] = (jnp.log(jnp.sum(jnp.exp(alpha_fin - mx), axis=-1, keepdims=True))
                     + mx).astype(logz_ref.dtype)


# ------------------------------ kernel wrappers ------------------------------

def linear_rows(x2d, w, b, out_dtype=jnp.float32):
    """Tiled (rows, Din) @ (Din, N) + b -> (rows, N).  N must be a multiple of 128."""
    rows, din = x2d.shape
    n = w.shape[-1]
    rt = min(512, _round_up(rows, 8))
    rows_p = _round_up(rows, rt)
    if rows_p != rows:
        x2d = jnp.pad(x2d, ((0, rows_p - rows), (0, 0)))
    y = pl.pallas_call(
        _linear_kernel,
        out_shape=jax.ShapeDtypeStruct((rows_p, n), out_dtype),
        grid=(rows_p // rt,),
        in_specs=[
            pl.BlockSpec((rt, din), lambda i: (i, 0)),
            pl.BlockSpec((din, n), lambda i: (0, 0)),
            pl.BlockSpec((1, n), lambda i: (0, 0)),
        ],
        out_specs=pl.BlockSpec((rt, n), lambda i: (i, 0)),
        compiler_params=pltpu.CompilerParams(dimension_semantics=("parallel",)),
    )(x2d, w, b)
    return y[:rows]


def bilstm_layer(x_tm, mask_tm3, layer_params):
    """x_tm: (T, B, Din) bf16 -> (T, B, 2H) bf16 (fwd | bwd written directly)."""
    w_ih, w_hh, b = layer_params      # (Din, 8H) bf16, (2, H, 4H) bf16, (1, 8H) f32
    T, B, Din = x_tm.shape
    H = w_hh.shape[1]
    # 1) hoisted input projection: all timesteps x both directions, one big MXU matmul
    g = linear_rows(x_tm.reshape(T * B, Din), w_ih, b, jnp.float32).reshape(T, B, 8 * H)
    # 2) serial recurrence (both directions per loop iteration)
    return pl.pallas_call(
        _bilstm_recurrence_kernel,
        out_shape=jax.ShapeDtypeStruct((T, B, 2 * H), jnp.bfloat16),
        scratch_shapes=[pltpu.VMEM((B, H), jnp.float32)] * 4,
    )(g, mask_tm3, w_hh[0], w_hh[1])


def fc_logits_padded(out_tm, w, b):
    """(T, B, 2H) bf16 -> lane-padded logits (T, B, 128) f32 (no label-dim slice)."""
    T, B, D = out_tm.shape
    y = linear_rows(out_tm.reshape(T * B, D), w, b, jnp.float32)
    return y.reshape(T, B, w.shape[-1])


def crf_logz(logits_tm, mask_tm3, trans_p, start_p, end_p):
    """logits_tm: (T, B, Lp) f32 -> logZ (B,) f32."""
    T, B, Lp = logits_tm.shape
    logz = pl.pallas_call(
        _crf_logz_kernel,
        out_shape=jax.ShapeDtypeStruct((B, 1), jnp.float32),
        scratch_shapes=[pltpu.VMEM((B, Lp), jnp.float32)],
    )(logits_tm, mask_tm3, trans_p, start_p, end_p)
    return logz[:, 0]


def crf_gold_score(logits_tm, tags_tm, mask_tm, trans, start, end, lengths):
    """Gold-path score (no recurrence): plain vectorized XLA ops outside the kernels."""
    emit = jnp.take_along_axis(logits_tm, tags_tm[:, :, None], axis=-1)[:, :, 0]  # (T,B)
    emit_sc = jnp.sum(emit * mask_tm, axis=0)                                     # (B,)
    trans_sc = jnp.sum(trans[tags_tm[:-1], tags_tm[1:]] * mask_tm[1:], axis=0)    # (B,)
    st = start[tags_tm[0]]                                                        # (B,)
    last_idx = jnp.maximum(lengths - 1, 0).astype(jnp.int32)
    last_tag = jnp.take_along_axis(tags_tm, last_idx[None, :], axis=0)[0]
    ed = end[last_tag]
    return emit_sc + trans_sc + st + ed


# Constrained Viterbi decode (labels is None branch).  Tiny DP + data-dependent
# backtrace kept in plain JAX glue (not a hot path).
# TODO(synk): port the Viterbi DP/backtrace into a Pallas kernel if it ever matters.
def viterbi_decode_tm(logits_tm, mask_tm, trans_m, start, end, constrain):
    T, B, L = logits_tm.shape
    transitions = constrain
    transitions = transitions.at[:L, :L].add(trans_m)
    transitions = transitions.at[L, :L].add(start)
    transitions = transitions.at[:L, L + 1].add(end)

    mask_b = mask_tm > 0.5
    vscore = logits_tm[0] + transitions[L, :L][None, :]
    trans_sc = transitions[:L, :L]

    def fwd_step(vs, inp):
        logit_i, m_i = inp
        score = vs[:, :, None] + trans_sc[None, :, :] + logit_i[:, None, :]
        best_prev = jnp.argmax(score, axis=1)
        best_score = jnp.max(score, axis=1)
        new_vs = jnp.where(m_i[:, None], best_score, vs)
        return new_vs, best_prev

    vscore_fin, vpaths = lax.scan(fwd_step, vscore, (logits_tm[1:], mask_b[1:]))
    final = vscore_fin + transitions[:L, L + 1][None, :]
    cur = jnp.argmax(final, axis=-1).astype(jnp.int32)

    def back_step(c, inp):
        vpath_i, m_i = inp
        ans_i = jnp.where(m_i, c, 0)
        prev = jnp.take_along_axis(vpath_i, c[:, None], axis=1)[:, 0].astype(jnp.int32)
        c_new = jnp.where(m_i, prev, c)
        return c_new, ans_i

    cur, ans_rev = lax.scan(back_step, cur, (vpaths[::-1], mask_b[1:][::-1]))
    ans_tail = ans_rev[::-1]
    ans0 = jnp.where(mask_b[0], cur, 0)[None]
    paths = jnp.concatenate([ans0, ans_tail], axis=0)   # (T, B)
    return jnp.transpose(paths, (1, 0))


# ------------------------------ parameters ------------------------------

def _xavier(key, shape, fan_in, fan_out):
    bound = float(np.sqrt(6.0 / (fan_in + fan_out)))
    return jax.random.uniform(key, shape, jnp.float32, -bound, bound)


def init_params(key, hidden_size, num_labels):
    H, L = hidden_size, num_labels
    Lp = LANE  # lane-padded label dim used end-to-end
    keys = iter(jax.random.split(key, 16))
    params = {}
    # 2 layers; per layer W_ih fused over gates AND directions: (Din, 8H) with column
    # layout [fwd i,f,g,o | bwd i,f,g,o]; combined bias (b_ih + b_hh), forget bias 1+1.
    for layer, din in ((0, H), (1, 2 * H)):
        w_ih = _xavier(next(keys), (din, 8 * H), din, 4 * H).astype(jnp.bfloat16)
        w_hh = _xavier(next(keys), (2, H, 4 * H), H, 4 * H).astype(jnp.bfloat16)
        b = (jnp.zeros((1, 8 * H), jnp.float32)
             .at[:, H:2 * H].set(2.0).at[:, 5 * H:6 * H].set(2.0))
        params[f"l{layer}"] = (w_ih, w_hh, b)
    # fc: Linear(2H, L) stored pre-transposed and lane-padded to (2H, 128)
    fc_w = _xavier(next(keys), (2 * H, L), 2 * H, L)
    fc_b = jax.random.uniform(next(keys), (L,), jnp.float32,
                              -1.0 / np.sqrt(2 * H), 1.0 / np.sqrt(2 * H))
    params["fc_w"] = (jnp.zeros((2 * H, Lp), jnp.float32).at[:, :L].set(fc_w)
                      .astype(jnp.bfloat16))
    params["fc_b"] = jnp.zeros((1, Lp), jnp.float32).at[0, :L].set(fc_b)
    # CRF params (fastNLP: randn), plus lane-padded copies (-1e4 pad, never -inf)
    trans_m = jax.random.normal(next(keys), (L, L), jnp.float32)
    start = jax.random.normal(next(keys), (L,), jnp.float32)
    end = jax.random.normal(next(keys), (L,), jnp.float32)
    params["trans_m"], params["start"], params["end"] = trans_m, start, end
    params["trans_p"] = jnp.full((Lp, Lp), NEG, jnp.float32).at[:L, :L].set(trans_m)
    params["start_p"] = jnp.full((1, Lp), NEG, jnp.float32).at[0, :L].set(start)
    params["end_p"] = jnp.full((1, Lp), NEG, jnp.float32).at[0, :L].set(end)
    return params


def build_constrain(labels):
    """fastNLP allowed_transitions(include_start_end=True) for BIO labels -> (L+2, L+2)."""
    def split_tag(lab):
        if lab == "O":
            return "o", ""
        t, _, suf = lab.partition("-")
        return t.lower(), suf

    def allowed(ft, fl, tt, tl):
        if tt == "start" or ft == "end":
            return False
        if ft == "start":
            return tt in ("b", "o")
        if ft in ("b", "i"):
            if tt in ("end", "b", "o"):
                return True
            if tt == "i":
                return fl == tl
            return False
        if ft == "o":
            return tt in ("end", "b", "o")
        return False

    L = len(labels)
    id2tag = {i: split_tag(lab) for i, lab in enumerate(labels)}
    id2tag[L] = ("start", "")
    id2tag[L + 1] = ("end", "")
    c = np.full((L + 2, L + 2), -10000.0, dtype=np.float32)
    for i in range(L + 2):
        for j in range(L + 2):
            ft, fl = id2tag[i]
            tt, tl = id2tag[j]
            if allowed(ft, fl, tt, tl):
                c[i, j] = 0.0
    return jnp.asarray(c)


# ------------------------------ model forward ------------------------------

def model_forward(params, constrain, num_labels, inputs, labels=None, mask=None):
    """Mirror of LSTMCRFSeqLabeling.forward (inputs batch-first, right-padded)."""
    B, T, _ = inputs.shape
    Bp = _round_up(B, 16)           # bf16 sublane packing (16 rows / vreg)
    pad = Bp - B
    if pad:
        inputs = jnp.pad(inputs, ((0, pad), (0, 0), (0, 0)))
        mask = jnp.pad(mask, ((0, pad), (0, 0)))
        if labels is not None:
            labels = jnp.pad(labels, ((0, pad), (0, 0)))

    # single transpose to time-major at the boundary; bf16 for the matmul path
    x_tm = jnp.transpose(inputs, (1, 0, 2)).astype(jnp.bfloat16)     # (T, Bp, H)
    mask_tm = jnp.transpose(mask, (1, 0)).astype(jnp.float32)        # (T, Bp)
    mask_tm3 = mask_tm[:, :, None]                                   # (T, Bp, 1)

    out0 = bilstm_layer(x_tm, mask_tm3, params["l0"])                # (T, Bp, 2H)
    out1 = bilstm_layer(out0, mask_tm3, params["l1"])                # (T, Bp, 2H)
    logits_tm = fc_logits_padded(out1, params["fc_w"], params["fc_b"])  # (T, Bp, 128)

    if labels is None:
        preds = viterbi_decode_tm(logits_tm[..., :num_labels], mask_tm,
                                  params["trans_m"], params["start"], params["end"],
                                  constrain)
        return preds[:B]

    tags_tm = jnp.transpose(labels, (1, 0)).astype(jnp.int32)
    lengths = jnp.sum(mask_tm, axis=0).astype(jnp.int32)
    logz = crf_logz(logits_tm, mask_tm3,
                    params["trans_p"], params["start_p"], params["end_p"])
    gold = crf_gold_score(logits_tm, tags_tm, mask_tm, params["trans_m"],
                          params["start"], params["end"], lengths)
    nll = logz - gold
    return jnp.mean(nll[:B])


# ------------------------------ demo ------------------------------

if __name__ == "__main__":
    label_names = ["O", "B-PER", "I-PER", "B-LOC", "I-LOC"]
    H = 32
    L = len(label_names)
    B, T = 2, 8

    key = jax.random.PRNGKey(0)
    kp, kx, kl = jax.random.split(key, 3)
    params = init_params(kp, H, L)
    constrain = build_constrain(label_names)

    inputs = jax.random.normal(kx, (B, T, H), jnp.float32)
    lengths = jnp.array([8, 5], dtype=jnp.int32)
    mask = (jnp.arange(T, dtype=jnp.int32)[None, :] < lengths[:, None]).astype(jnp.float32)
    gold = jax.random.randint(kl, (B, T), 0, L, dtype=jnp.int32)

    # labels provided -> mean CRF negative log-likelihood (scalar)
    loss = model_forward(params, constrain, L, inputs, labels=gold, mask=mask)
    # labels=None -> constrained Viterbi-decoded tag ids (B, T)
    preds = model_forward(params, constrain, L, inputs, labels=None, mask=mask)

    loss = jax.block_until_ready(loss)
    preds = jax.block_until_ready(preds)

    assert loss.shape == () and bool(jnp.isfinite(loss))
    assert preds.shape == (B, T)
    print("KERNEL_OK")
</pallas_src>

<mosaic_0001>
module attributes {stable_mosaic.version = 11 : i64} {
  func.func @_linear_kernel(%arg0: i32, %arg1: memref<128x32xbf16, #tpu.memory_space<vmem>>, %arg2: memref<32x256xbf16, #tpu.memory_space<vmem>>, %arg3: memref<1x256xf32, #tpu.memory_space<vmem>>, %arg4: memref<128x256xf32, #tpu.memory_space<vmem>>) attributes {dimension_semantics = [#tpu.dimension_semantics<parallel>], iteration_bounds = array<i64: 1>, scalar_prefetch = 0 : i64, scratch_operands = 0 : i64, tpu.core_type = #tpu.core_type<tc>, window_params = [{transform_indices = @transform_0, window_bounds = array<i64: 128, 32>}, {pipeline_mode = #tpu.pipeline_mode<synchronous>, transform_indices = @transform_1, window_bounds = array<i64: 32, 256>}, {pipeline_mode = #tpu.pipeline_mode<synchronous>, transform_indices = @transform_2, window_bounds = array<i64: 1, 256>}, {transform_indices = @transform_3, window_bounds = array<i64: 128, 256>}]} {
    %c0 = arith.constant 0 : index
    %c0_0 = arith.constant 0 : index
    %0 = vector.load %arg1[%c0, %c0_0] : memref<128x32xbf16, #tpu.memory_space<vmem>>, vector<128x32xbf16>
    %c0_1 = arith.constant 0 : index
    %c0_2 = arith.constant 0 : index
    %1 = vector.load %arg2[%c0_1, %c0_2] : memref<32x256xbf16, #tpu.memory_space<vmem>>, vector<32x256xbf16>
    %cst = arith.constant dense<0.000000e+00> : vector<128x256xf32>
    %2 = tpu.matmul %0, %1, %cst {dimension_numbers = #tpu.dot_dimension_numbers<[1], [0], [0], [1], [0, 0, 1, 1], [], []>} : vector<128x32xbf16>, vector<32x256xbf16>, vector<128x256xf32> -> vector<128x256xf32>
    %c0_3 = arith.constant 0 : index
    %c0_4 = arith.constant 0 : index
    %3 = vector.load %arg3[%c0_3, %c0_4] : memref<1x256xf32, #tpu.memory_space<vmem>>, vector<1x256xf32>
    %4 = vector.broadcast %3 : vector<1x256xf32> to vector<128x256xf32>
    %5 = arith.addf %2, %4 : vector<128x256xf32>
    %c0_5 = arith.constant 0 : index
    %c0_6 = arith.constant 0 : index
    %6 = vector.load %arg4[%c0_5, %c0_6] : memref<128x256xf32, #tpu.memory_space<vmem>>, vector<128x256xf32>
    tpu.vector_store %arg4[%c0_5, %c0_6], %5 {strides = array<i32>} : memref<128x256xf32, #tpu.memory_space<vmem>>, vector<128x256xf32>,
    return
  }
  func.func @transform_0(%arg0: i32) -> (i32, i32) {
    %c0_i32 = arith.constant 0 : i32
    %c0_i32_0 = arith.constant 0 : i32
    return %arg0, %c0_i32 : i32, i32
  }
  func.func @transform_1(%arg0: i32) -> (i32, i32) {
    %c0_i32 = arith.constant 0 : i32
    %c0_i32_0 = arith.constant 0 : i32
    %c0_i32_1 = arith.constant 0 : i32
    return %c0_i32, %c0_i32_0 : i32, i32
  }
  func.func @transform_2(%arg0: i32) -> (i32, i32) {
    %c0_i32 = arith.constant 0 : i32
    %c0_i32_0 = arith.constant 0 : i32
    %c0_i32_1 = arith.constant 0 : i32
    return %c0_i32, %c0_i32_0 : i32, i32
  }
  func.func @transform_3(%arg0: i32) -> (i32, i32) {
    %c0_i32 = arith.constant 0 : i32
    %c0_i32_0 = arith.constant 0 : i32
    return %arg0, %c0_i32 : i32, i32
  }
}

</mosaic_0001>

<bundles_post_ra>
// kernel: tpu_custom_call.1
= control target key start
LH: loop header
LB: loop body
LE: loop exit
PB: predicated region body
PF: predicated region fallthrough
CT: control target
= control target key end

     0   :  { %v360_v2 = vmov 0   ;;  %vm108_vm0 = vcmask 261120   ;;  %s479_s0 = inlined_call_operand.vmem [shape: bf16[128,32], index: 0, kind: input, shape index: {}]   ;;  %s480_s1 = inlined_call_operand.vmem [shape: bf16[32,256], index: 1, kind: input, shape index: {}]   ;;  %s481_s2 = inlined_call_operand.vmem [shape: f32[1,256], index: 2, kind: input, shape index: {}]   ;;  %s482_s3 = inlined_call_operand.hbm [shape: f32[128,256], index: 3, kind: output, shape index: {}]  }
   0x1   :  { %v322_v0 = vld [vmem:[%s480_s1 + $0x4] ss:$8 sps:$4 sm:$0xff]   ;;  %v324_v1 = vld [vmem:[%s480_s1] ss:$8 sps:$4 sm:$0xff]   ;;  %165 = vmatprep.mubr.bf16.mxu0 %v360_v2  ;;  %205 = vmatprep.mubr.bf16.mxu1 %v360_v2  ;;  %v325_v3 = vld [vmem:[%s480_s1 + $0x14] ss:$8 sps:$4 sm:$0xff]  }
   0x2   :  { %133 = vmatprep.subr.bf16.mxu0 %v322_v0  ;;  %314 = vmatprep.subr.bf16.mxu1 %v322_v0  ;;  %v327_v4 = vld [vmem:[%s480_s1 + $0x10] ss:$8 sps:$4 sm:$0xff]   ;;  %v328_v5 = vld [vmem:[%s479_s0] sm:$0xff]  }
   0x3   :  { %134 = vmatpush1.bf16.msra.mxu0 %v324_v1  ;;  %316 = vmatpush1.bf16.msra.mxu1 %v324_v1  ;;  %v329_v6 = vld [vmem:[%s479_s0 + $0x20] sm:$0xff]  }
   0x4   :  { %135 = vmatprep.subr.bf16.mxu0 %v325_v3  ;;  %315 = vmatprep.subr.bf16.mxu1 %v325_v3 }
   0x7   :  { %136 = vmatpush1.bf16.msra.mxu0 %v327_v4  ;;  %317 = vmatpush1.bf16.msra.mxu1 %v327_v4 }
   0xa   :  { %306 = vmatmul.mubr.msk.bf16.vlgmr.msra.gmra.mrb[0].mxu0 %vm108_vm0, %v328_v5  ;;  %310 = vmatmul.mubr.msk.bf16.vlgmr.msra.gmra.mrb[0].mxu1 %vm108_vm0, %v329_v6 }
   0xb   :  { %175 = vmatprep.mubr.bf16.mxu0 %v360_v2  ;;  %215 = vmatprep.mubr.bf16.mxu1 %v360_v2 }
   0xc   :  { %8 = vsyncpa [#allocation3], 0  ;;  %v330_v7 = vld [vmem:[%s479_s0 + $0x8] sm:$0xff]   ;;  %v332_v9 = vld [vmem:[%s479_s0 + $0x10] sm:$0xff]   ;;  %v38_v13 = vlaneseq }
   0xd   :  { %v331_v8 = vld [vmem:[%s479_s0 + $0x28] sm:$0xff]   ;;  %v333_v10 = vld [vmem:[%s479_s0 + $0x30] sm:$0xff]   ;;  %v334_v11 = vld [vmem:[%s479_s0 + $0x18] sm:$0xff]  }
   0xe   :  { %v335_v12 = vld [vmem:[%s479_s0 + $0x38] sm:$0xff]   ;;  %v39_v14 = vshrl.u32 %v38_v13, 7  ;;  %v36_v16 = vld [vmem:[%s481_s2] sm:$0x3]  ;;  %s361_s0 = smov [#allocation2]  }
   0xf   :  { %s283_s2 = sshll.u32 %s361_s0, 4  ;;  %s284_s2 = int_to_ptr.vmem [resolvable:$true] %s283_s2 }
  0x10   :  { %v40_v15 = vsub.s32 0, %v39_v14  ;;  %v44_v17 = vsub.s32 1, %v39_v14  ;;  %s336_s10 = scalar_lea.vmem %s284_s2, 4096  ;;  %p341_p1 = scmp.lt.s32.totalorder %s284_s2, %s284_s2 }
  0x11   :  { %p337_p0 = scmp.ne.s32.totalorder %s284_s2, %s336_s10  ;;  %p342_p2 = scmp.lt.s32.totalorder %s336_s10, %s336_s10 }
  0x12   :  { %307 = vmatmul.mubr.msk.bf16.gmra.mrb[4].mxu0 %vm108_vm0, %v330_v7  ;;  %311 = vmatmul.mubr.msk.bf16.gmra.mrb[4].mxu1 %vm108_vm0, %v331_v8  ;;  %v431_v18 = vrot.slane %v36_v16, %v40_v15  ;;  %v433_v19 = vrot.slane %v36_v16, %v44_v17 }
  0x13   :  { %185 = vmatprep.mubr.bf16.mxu0 %v360_v2  ;;  %225 = vmatprep.mubr.bf16.mxu1 %v360_v2  ;;  %p343_p3 = por %p342_p2, %p341_p1 }
  0x15   :  { %p344_p4 = pnand %p343_p3, %p337_p0 }
  0x1a   :  { %308 = vmatmul.mubr.msk.bf16.gmra.mrb[8].mxu0 %vm108_vm0, %v332_v9  ;;  %312 = vmatmul.mubr.msk.bf16.gmra.mrb[8].mxu1 %vm108_vm0, %v333_v10 }
  0x1b   :  { %195 = vmatprep.mubr.bf16.mxu0 %v360_v2  ;;  %235 = vmatprep.mubr.bf16.mxu1 %v360_v2 }
  0x22   :  { %309 = vmatmul.mubr.msk.bf16.gmra.mrb[12].mxu0 %vm108_vm0, %v334_v11  ;;  %313 = vmatmul.mubr.msk.bf16.gmra.mrb[12].mxu1 %vm108_vm0, %v335_v12 }
  0xdd   :  { %v167_v20 = vpop.f32.mrb[0].mxu0  ;;  %v207_v21 = vpop.f32.mrb[0].mxu1 }
  0xde   :  { %v168_v22 = vadd.f32 %v167_v20, %v431_v18  ;;  %v208_v23 = vadd.f32 %v207_v21, %v431_v18  ;;  %v169_v24 = vpop.f32.mrb[1].mxu0  ;;  %v209_v25 = vpop.f32.mrb[1].mxu1 }
  0xdf   :  { %v170_v26 = vadd.f32 %v169_v24, %v433_v19  ;;  %v210_v27 = vadd.f32 %v209_v25, %v433_v19  ;;  %v171_v28 = vpop.f32.mrb[2].mxu0  ;;  %v211_v29 = vpop.f32.mrb[2].mxu1 }
  0xe0   :  { %246 = vst [vmem:[#allocation2] sm:$0xff] %v168_v22  ;;  %262 = vst [vmem:[#allocation2 + $0x80] sm:$0xff] %v208_v23  ;;  %v172_v30 = vadd.f32 %v171_v28, %v431_v18  ;;  %v212_v31 = vadd.f32 %v211_v29, %v431_v18  ;;  %v173_v32 = vpop.f32.mrb[3].mxu0  ;;  %v213_v33 = vpop.f32.mrb[3].mxu1 }
  0xe1   :  { %247 = vst [vmem:[#allocation2 + $0x8] sm:$0xff] %v170_v26  ;;  %263 = vst [vmem:[#allocation2 + $0x88] sm:$0xff] %v210_v27  ;;  %v174_v34 = vadd.f32 %v173_v32, %v433_v19  ;;  %v214_v35 = vadd.f32 %v213_v33, %v433_v19 }
  0xe2   :  { %248 = vst [vmem:[#allocation2 + $0x10] sm:$0xff] %v172_v30  ;;  %264 = vst [vmem:[#allocation2 + $0x90] sm:$0xff] %v212_v31 }
  0xe3   :  { %249 = vst [vmem:[#allocation2 + $0x18] sm:$0xff] %v174_v34  ;;  %265 = vst [vmem:[#allocation2 + $0x98] sm:$0xff] %v214_v35 }
  0xe5   :  { %v177_v36 = vpop.f32.mrb[4].mxu0  ;;  %v217_v37 = vpop.f32.mrb[4].mxu1 }
  0xe6   :  { %v178_v38 = vadd.f32 %v177_v36, %v431_v18  ;;  %v218_v39 = vadd.f32 %v217_v37, %v431_v18  ;;  %v179_v40 = vpop.f32.mrb[5].mxu0  ;;  %v219_v41 = vpop.f32.mrb[5].mxu1 }
  0xe7   :  { %v180_v42 = vadd.f32 %v179_v40, %v433_v19  ;;  %v220_v43 = vadd.f32 %v219_v41, %v433_v19  ;;  %v181_v44 = vpop.f32.mrb[6].mxu0  ;;  %v221_v45 = vpop.f32.mrb[6].mxu1 }
  0xe8   :  { %250 = vst [vmem:[#allocation2 + $0x20] sm:$0xff] %v178_v38  ;;  %266 = vst [vmem:[#allocation2 + $0xa0] sm:$0xff] %v218_v39  ;;  %v182_v46 = vadd.f32 %v181_v44, %v431_v18  ;;  %v222_v47 = vadd.f32 %v221_v45, %v431_v18  ;;  %v183_v48 = vpop.f32.mrb[7].mxu0  ;;  %v223_v49 = vpop.f32.mrb[7].mxu1 }
  0xe9   :  { %251 = vst [vmem:[#allocation2 + $0x28] sm:$0xff] %v180_v42  ;;  %267 = vst [vmem:[#allocation2 + $0xa8] sm:$0xff] %v220_v43  ;;  %v184_v50 = vadd.f32 %v183_v48, %v433_v19  ;;  %v224_v51 = vadd.f32 %v223_v49, %v433_v19 }
  0xea   :  { %252 = vst [vmem:[#allocation2 + $0x30] sm:$0xff] %v182_v46  ;;  %268 = vst [vmem:[#allocation2 + $0xb0] sm:$0xff] %v222_v47 }
  0xeb   :  { %253 = vst [vmem:[#allocation2 + $0x38] sm:$0xff] %v184_v50  ;;  %269 = vst [vmem:[#allocation2 + $0xb8] sm:$0xff] %v224_v51 }
  0xed   :  { %v187_v52 = vpop.f32.mrb[8].mxu0  ;;  %v227_v53 = vpop.f32.mrb[8].mxu1 }
  0xee   :  { %v188_v54 = vadd.f32 %v187_v52, %v431_v18  ;;  %v228_v55 = vadd.f32 %v227_v53, %v431_v18  ;;  %v189_v56 = vpop.f32.mrb[9].mxu0  ;;  %v229_v57 = vpop.f32.mrb[9].mxu1 }
  0xef   :  { %v190_v58 = vadd.f32 %v189_v56, %v433_v19  ;;  %v230_v59 = vadd.f32 %v229_v57, %v433_v19  ;;  %v191_v60 = vpop.f32.mrb[10].mxu0  ;;  %v231_v61 = vpop.f32.mrb[10].mxu1 }
  0xf0   :  { %254 = vst [vmem:[#allocation2 + $0x40] sm:$0xff] %v188_v54  ;;  %270 = vst [vmem:[#allocation2 + $0xc0] sm:$0xff] %v228_v55  ;;  %v192_v62 = vadd.f32 %v191_v60, %v431_v18  ;;  %v232_v63 = vadd.f32 %v231_v61, %v431_v18  ;;  %v193_v0 = vpop.f32.mrb[11].mxu0  ;;  %v233_v1 = vpop.f32.mrb[11].mxu1 }
  0xf1   :  { %255 = vst [vmem:[#allocation2 + $0x48] sm:$0xff] %v190_v58  ;;  %271 = vst [vmem:[#allocation2 + $0xc8] sm:$0xff] %v230_v59  ;;  %v194_v2 = vadd.f32 %v193_v0, %v433_v19  ;;  %v234_v3 = vadd.f32 %v233_v1, %v433_v19 }
  0xf2   :  { %256 = vst [vmem:[#allocation2 + $0x50] sm:$0xff] %v192_v62  ;;  %272 = vst [vmem:[#allocation2 + $0xd0] sm:$0xff] %v232_v63 }
  0xf3   :  { %257 = vst [vmem:[#allocation2 + $0x58] sm:$0xff] %v194_v2  ;;  %273 = vst [vmem:[#allocation2 + $0xd8] sm:$0xff] %v234_v3 }
  0xf5   :  { %v197_v4 = vpop.f32.mrb[12].mxu0  ;;  %v237_v5 = vpop.f32.mrb[12].mxu1 }
  0xf6   :  { %v198_v6 = vadd.f32 %v197_v4, %v431_v18  ;;  %v238_v7 = vadd.f32 %v237_v5, %v431_v18  ;;  %v199_v8 = vpop.f32.mrb[13].mxu0  ;;  %v239_v9 = vpop.f32.mrb[13].mxu1 }
  0xf7   :  { %v200_v10 = vadd.f32 %v199_v8, %v433_v19  ;;  %v240_v11 = vadd.f32 %v239_v9, %v433_v19  ;;  %v201_v12 = vpop.f32.mrb[14].mxu0  ;;  %v241_v13 = vpop.f32.mrb[14].mxu1 }
  0xf8   :  { %258 = vst [vmem:[#allocation2 + $0x60] sm:$0xff] %v198_v6  ;;  %274 = vst [vmem:[#allocation2 + $0xe0] sm:$0xff] %v238_v7  ;;  %v202_v14 = vadd.f32 %v201_v12, %v431_v18  ;;  %v242_v15 = vadd.f32 %v241_v13, %v431_v18  ;;  %v203_v16 = vpop.f32.mrb[15].mxu0  ;;  %v243_v17 = vpop.f32.mrb[15].mxu1 }
  0xf9   :  { %259 = vst [vmem:[#allocation2 + $0x68] sm:$0xff] %v200_v10  ;;  %275 = vst [vmem:[#allocation2 + $0xe8] sm:$0xff] %v240_v11  ;;  %v204_v20 = vadd.f32 %v203_v16, %v433_v19  ;;  %v244_v21 = vadd.f32 %v243_v17, %v433_v19 }
  0xfa   :  { %260 = vst [vmem:[#allocation2 + $0x70] sm:$0xff] %v202_v14  ;;  %276 = vst [vmem:[#allocation2 + $0xf0] sm:$0xff] %v242_v15 }
  0xfb   :  { %261 = vst [vmem:[#allocation2 + $0x78] sm:$0xff] %v204_v20  ;;  %277 = vst [vmem:[#allocation2 + $0xf8] sm:$0xff] %v244_v21 }
  0xfc   :  { %347 = shalt.err (!%p344_p4)
}
  0xfd   :  { %s348_s13 = scalar_lea.hbm %s482_s3, 4096 }
  0xfe   :  { %p349_p5 = scmp.ne.s32.totalorder %s482_s3, %s348_s13  ;;  %p352_p6 = scmp.lt.u32.totalorder %s348_s13, %s482_s3 }
 0x100   :  { %p354_p7 = pnand %p352_p6, %p349_p5 }
 0x102   :  { %357 = shalt.err (!%p354_p7)
}
 0x103   :  { %s362_s18 = smov 256   ;;  %s363_s19 = smov 16  }
 0x104   :  { %289 = dma.vmem_to_hbm [thread:$0]  %s284_s2, 4096, %s482_s3, [#allocation3], %s362_s18, %s362_s18, %s363_s19  }
 0x105   :  { %358 = dma.done.wait [#allocation3], 4096  }
 0x106   :  { %359 = vsyncadd [#allocation3], 4294963200 }
 0x107   :  { %293 = vsyncpa [#allocation3], 1 }

</bundles_post_ra>
